<compile_context>
chip_gen: v5e
topology: v5e:2x2
jax: 0.10.0
libtpu: 0.0.40
codegen_flags: <defaults>
</compile_context>

<pallas_src>
import jax
import jax.numpy as jnp
from jax.experimental import pallas as pl
from jax.experimental.pallas import tpu as pltpu


def _round_up(n, m):
    return ((n + m - 1) // m) * m


def _cdiv(a, b):
    return -(-a // b)


def _device_info():
    """Returns (vmem_capacity_bytes, num_tensorcores) with conservative fallbacks."""
    vmem_cap = 64 << 20   # conservative default = v7x per-core VMEM
    cores = 2             # default 2: helps v7x, negligible cost on 1-TC chips
    try:
        info = pltpu.get_tpu_info()
        vmem_cap = int(getattr(info, "vmem_capacity_bytes", vmem_cap) or vmem_cap)
        for attr in ("num_cores", "core_count", "num_tensorcores", "tensorcore_count"):
            v = getattr(info, attr, None)
            if v:
                cores = int(v)
                break
    except Exception:
        pass
    return vmem_cap, max(1, cores)


def _swapnet_ab_kernel(x_ref, w1t_ref, w2t_ref, o_ref, acc_ref):
    # x_ref  : (TB, TK)      activation tile (streamed, double-buffered)
    # w1t_ref: (TK, Cout)    fc  weight, already transposed -> standard contraction
    # w2t_ref: (Cout, Cout)  fc1 weight, already transposed
    # o_ref  : (TB, Cout)    output tile (resident across the K axis)
    # acc_ref: (TB, Cout)    f32 GEMM1 accumulator (VMEM scratch)
    k = pl.program_id(1)

    @pl.when(k == 0)
    def _init():
        acc_ref[...] = jnp.zeros_like(acc_ref)

    # GEMM1 partial sum.  Cast the activation tile in-kernel (no-op for the f32
    # path); the bf16 cast rides the VPU and hides under the x DMA.
    x_tile = x_ref[...].astype(w1t_ref.dtype)
    acc_ref[...] += jnp.dot(x_tile, w1t_ref[...],
                            preferred_element_type=jnp.float32)

    @pl.when(k == pl.num_programs(1) - 1)
    def _finalize():
        # GEMM2, fully fused: the intermediate never touches HBM.
        h = acc_ref[...].astype(w2t_ref.dtype)
        out = jnp.dot(h, w2t_ref[...], preferred_element_type=jnp.float32)
        o_ref[...] = out.astype(o_ref.dtype)


def swapnet_ab_forward(x, w_fc, w_fc1, *, compute_dtype=None):
    """x: (B, ...); w_fc: (Cout, Cin); w_fc1: (Cout, Cout). Returns (B, Cout)."""
    B = x.shape[0]
    x2d = x.reshape(B, -1)                      # matches torch .view(B, -1)
    Cin = x2d.shape[1]
    Cout = w_fc.shape[0]
    assert w_fc.shape == (Cout, Cin)
    assert w_fc1.shape == (Cout, Cout)

    out_dtype = x2d.dtype
    w_dtype = compute_dtype if compute_dtype is not None else x2d.dtype

    # One-time wrapper transpose of the (small) weights -> (K, N) layout.
    # x is deliberately NOT cast here (would be a full extra HBM pass over x).
    w1t = w_fc.T.astype(w_dtype)                # (Cin, Cout)
    w2t = w_fc1.T.astype(w_dtype)               # (Cout, Cout)

    x_item = jnp.dtype(x2d.dtype).itemsize
    w_item = jnp.dtype(w_dtype).itemsize
    out_item = jnp.dtype(out_dtype).itemsize

    vmem_cap, num_cores = _device_info()
    cap = min(int(0.85 * vmem_cap), 100 << 20)  # ~54 MiB on v7x, <=100 MiB v5e/v6e

    # ---- batch tile: balanced tiles, >= num_cores grid steps when possible ---
    TB_MAX = 256
    if B <= 8:
        TB = B                                  # full-extent sublane block
    else:
        n_tiles = max(num_cores, _cdiv(B, TB_MAX))
        TB = min(_round_up(_cdiv(B, n_tiles), 8), B)

    def need_bytes(tb, tk):
        # Conservative: assume every block (incl. grid-invariant weights) is
        # double-buffered.  (Could force pl.Buffered(1) on the weight specs,
        # but budgeting for 2x is safe either way.)
        return (2 * tb * tk * x_item            # x tile
                + 2 * tk * Cout * w_item        # W1^T tile
                + 2 * Cout * Cout * w_item      # W2^T
                + 2 * tb * Cout * out_item      # out tile
                + tb * Cout * 4)                # f32 accumulator scratch

    # ---- K (Cin) split only when the resident config would blow VMEM --------
    TK = Cin                                    # single full-extent K block
    Cin_p = Cin
    if need_bytes(TB, Cin) > cap:
        tk_cands = (4096, 2048, 1024, 512, 256, 128)
        fitting = [t for t in tk_cands if need_bytes(TB, t) <= cap]
        while not fitting and TB > 8:
            TB = max(8, _round_up(TB // 2, 8))
            fitting = [t for t in tk_cands if need_bytes(TB, t) <= cap]
        if fitting:
            exact = [t for t in fitting if Cin % t == 0]   # avoid Cin padding
            TK = exact[0] if exact else fitting[0]
        else:
            TK = 128    # last resort; compiler will report if truly impossible
        Cin_p = _round_up(Cin, TK)

    # Zero-pad Cin only when a ragged K block would otherwise read garbage into
    # the contraction (batch is never padded; output raggedness is clipped).
    if Cin_p != Cin:
        x2d = jnp.pad(x2d, ((0, 0), (0, Cin_p - Cin)))
        w1t = jnp.pad(w1t, ((0, Cin_p - Cin), (0, 0)))

    nb = _cdiv(B, TB)
    nk = Cin_p // TK
    grid = (nb, nk)

    vmem_need = need_bytes(TB, TK)
    vmem_limit = int(min(cap, max(2 * vmem_need, 32 << 20)))

    cost = pl.CostEstimate(
        flops=int(2 * B * Cin_p * Cout + 2 * B * Cout * Cout),
        transcendentals=0,
        bytes_accessed=int(B * Cin_p * x_item
                           + (Cin_p * Cout + Cout * Cout) * w_item
                           + B * Cout * out_item),
    )

    out = pl.pallas_call(
        _swapnet_ab_kernel,
        out_shape=jax.ShapeDtypeStruct((B, Cout), out_dtype),
        grid=grid,
        in_specs=[
            pl.BlockSpec((TB, TK), lambda i, k: (i, k)),        # x tile
            pl.BlockSpec((TK, Cout), lambda i, k: (k, 0)),      # W1^T tile
            pl.BlockSpec((Cout, Cout), lambda i, k: (0, 0)),    # W2^T resident
        ],
        out_specs=pl.BlockSpec((TB, Cout), lambda i, k: (i, 0)),
        scratch_shapes=[pltpu.VMEM((TB, Cout), jnp.float32)],
        compiler_params=pltpu.CompilerParams(
            dimension_semantics=("parallel", "arbitrary"),
            vmem_limit_bytes=vmem_limit,
        ),
        cost_estimate=cost,
    )(x2d, w1t, w2t)

    return out


def reference_forward(x, w_fc, w_fc1):
    x2d = x.reshape(x.shape[0], -1)
    return (x2d @ w_fc.T) @ w_fc1.T


if __name__ == "__main__":
    key = jax.random.PRNGKey(0)
    kx, k1, k2, kx2 = jax.random.split(key, 4)

    # Small deterministic shapes: x (2, 4, 16, 16) flattens to in_channels=1024.
    B, C, Hs, Ws = 2, 4, 16, 16
    in_channels = C * Hs * Ws            # 1024
    out_channels = 32

    x = jax.random.normal(kx, (B, C, Hs, Ws), dtype=jnp.float32)

    # Kaiming-uniform-like init (bound = 1/sqrt(fan_in)), synthetic.
    bound1 = 1.0 / jnp.sqrt(in_channels)
    bound2 = 1.0 / jnp.sqrt(out_channels)
    w_fc = jax.random.uniform(k1, (out_channels, in_channels),
                              minval=-bound1, maxval=bound1, dtype=jnp.float32)
    w_fc1 = jax.random.uniform(k2, (out_channels, out_channels),
                               minval=-bound2, maxval=bound2, dtype=jnp.float32)

    ref = reference_forward(x, w_fc, w_fc1)

    # f32 path (default)
    out = swapnet_ab_forward(x, w_fc, w_fc1)
    out = jax.block_until_ready(out)
    assert out.shape == (B, out_channels)
    assert jnp.allclose(out, ref, atol=2e-4, rtol=2e-4), "f32 mismatch vs reference"

    # bf16 compute path (weights bf16, x cast in-kernel, f32 MXU accumulation).
    out_bf16 = swapnet_ab_forward(x, w_fc, w_fc1, compute_dtype=jnp.bfloat16)
    out_bf16 = jax.block_until_ready(out_bf16)
    assert out_bf16.shape == (B, out_channels)
    assert jnp.allclose(out_bf16, ref, atol=5e-2, rtol=5e-2), "bf16 mismatch vs reference"

    # Multi-tile / ragged-batch path (no batch padding; last block clipped).
    B2 = 20
    x2 = jax.random.normal(kx2, (B2, C, Hs, Ws), dtype=jnp.float32)
    ref2 = reference_forward(x2, w_fc, w_fc1)
    out2 = jax.block_until_ready(swapnet_ab_forward(x2, w_fc, w_fc1))
    assert out2.shape == (B2, out_channels)
    assert jnp.allclose(out2, ref2, atol=2e-4, rtol=2e-4), "ragged-batch mismatch vs reference"

    print("KERNEL_OK")
</pallas_src>

<mosaic_0001>
module attributes {stable_mosaic.version = 11 : i64} {
  func.func @_swapnet_ab_kernel(%arg0: i32, %arg1: i32, %arg2: memref<2x1024xf32, #tpu.memory_space<vmem>>, %arg3: memref<1024x32xf32, #tpu.memory_space<vmem>>, %arg4: memref<32x32xf32, #tpu.memory_space<vmem>>, %arg5: memref<2x32xf32, #tpu.memory_space<vmem>>, %arg6: memref<2x32xf32, #tpu.memory_space<vmem>>) attributes {dimension_semantics = [#tpu.dimension_semantics<parallel>, #tpu.dimension_semantics<arbitrary>], iteration_bounds = array<i64: 1, 1>, scalar_prefetch = 0 : i64, scratch_operands = 1 : i64, tpu.core_type = #tpu.core_type<tc>, window_params = [{transform_indices = @transform_0, window_bounds = array<i64: 2, 1024>}, {transform_indices = @transform_1, window_bounds = array<i64: 1024, 32>}, {pipeline_mode = #tpu.pipeline_mode<synchronous>, transform_indices = @transform_2, window_bounds = array<i64: 32, 32>}, {transform_indices = @transform_3, window_bounds = array<i64: 2, 32>}]} {
    %c0_i32 = arith.constant 0 : i32
    %0 = arith.cmpi eq, %arg1, %c0_i32 : i32
    %1 = arith.extui %0 : i1 to i32
    %c0_i32_0 = arith.constant 0 : i32
    %2 = arith.cmpi ne, %1, %c0_i32_0 : i32
    scf.if %2 {
      %cst_10 = arith.constant 0.000000e+00 : f32
      %12 = vector.broadcast %cst_10 : f32 to vector<2x32xf32>
      %c0_11 = arith.constant 0 : index
      %c0_12 = arith.constant 0 : index
      %13 = vector.load %arg6[%c0_11, %c0_12] : memref<2x32xf32, #tpu.memory_space<vmem>>, vector<2x32xf32>
      tpu.vector_store %arg6[%c0_11, %c0_12], %12 {strides = array<i32>} : memref<2x32xf32, #tpu.memory_space<vmem>>, vector<2x32xf32>,
    } else {
    }
    %c0 = arith.constant 0 : index
    %c0_1 = arith.constant 0 : index
    %3 = vector.load %arg2[%c0, %c0_1] : memref<2x1024xf32, #tpu.memory_space<vmem>>, vector<2x1024xf32>
    %c0_2 = arith.constant 0 : index
    %c0_3 = arith.constant 0 : index
    %4 = vector.load %arg6[%c0_2, %c0_3] : memref<2x32xf32, #tpu.memory_space<vmem>>, vector<2x32xf32>
    %c0_4 = arith.constant 0 : index
    %c0_5 = arith.constant 0 : index
    %5 = vector.load %arg3[%c0_4, %c0_5] : memref<1024x32xf32, #tpu.memory_space<vmem>>, vector<1024x32xf32>
    %cst = arith.constant dense<0.000000e+00> : vector<2x32xf32>
    %6 = tpu.matmul %3, %5, %cst {dimension_numbers = #tpu.dot_dimension_numbers<[1], [0], [0], [1], [0, 0, 1, 1], [], []>} : vector<2x1024xf32>, vector<1024x32xf32>, vector<2x32xf32> -> vector<2x32xf32>
    %7 = arith.addf %4, %6 : vector<2x32xf32>
    %c0_6 = arith.constant 0 : index
    %c0_7 = arith.constant 0 : index
    %8 = vector.load %arg6[%c0_6, %c0_7] : memref<2x32xf32, #tpu.memory_space<vmem>>, vector<2x32xf32>
    tpu.vector_store %arg6[%c0_6, %c0_7], %7 {strides = array<i32>} : memref<2x32xf32, #tpu.memory_space<vmem>>, vector<2x32xf32>,
    %c0_i32_8 = arith.constant 0 : i32
    %9 = arith.cmpi eq, %arg1, %c0_i32_8 : i32
    %10 = arith.extui %9 : i1 to i32
    %c0_i32_9 = arith.constant 0 : i32
    %11 = arith.cmpi ne, %10, %c0_i32_9 : i32
    scf.if %11 {
      %c0_10 = arith.constant 0 : index
      %c0_11 = arith.constant 0 : index
      %12 = vector.load %arg6[%c0_10, %c0_11] : memref<2x32xf32, #tpu.memory_space<vmem>>, vector<2x32xf32>
      %c0_12 = arith.constant 0 : index
      %c0_13 = arith.constant 0 : index
      %13 = vector.load %arg4[%c0_12, %c0_13] : memref<32x32xf32, #tpu.memory_space<vmem>>, vector<32x32xf32>
      %cst_14 = arith.constant dense<0.000000e+00> : vector<2x32xf32>
      %14 = tpu.matmul %12, %13, %cst_14 {dimension_numbers = #tpu.dot_dimension_numbers<[1], [0], [0], [1], [0, 0, 1, 1], [], []>} : vector<2x32xf32>, vector<32x32xf32>, vector<2x32xf32> -> vector<2x32xf32>
      %c0_15 = arith.constant 0 : index
      %c0_16 = arith.constant 0 : index
      %15 = vector.load %arg5[%c0_15, %c0_16] : memref<2x32xf32, #tpu.memory_space<vmem>>, vector<2x32xf32>
      tpu.vector_store %arg5[%c0_15, %c0_16], %14 {strides = array<i32>} : memref<2x32xf32, #tpu.memory_space<vmem>>, vector<2x32xf32>,
    } else {
    }
    return
  }
  func.func @transform_0(%arg0: i32, %arg1: i32) -> (i32, i32) {
    %c0_i32 = arith.constant 0 : i32
    return %arg0, %arg1 : i32, i32
  }
  func.func @transform_1(%arg0: i32, %arg1: i32) -> (i32, i32) {
    %c0_i32 = arith.constant 0 : i32
    %c0_i32_0 = arith.constant 0 : i32
    return %arg1, %c0_i32 : i32, i32
  }
  func.func @transform_2(%arg0: i32, %arg1: i32) -> (i32, i32) {
    %c0_i32 = arith.constant 0 : i32
    %c0_i32_0 = arith.constant 0 : i32
    %c0_i32_1 = arith.constant 0 : i32
    return %c0_i32, %c0_i32_0 : i32, i32
  }
  func.func @transform_3(%arg0: i32, %arg1: i32) -> (i32, i32) {
    %c0_i32 = arith.constant 0 : i32
    %c0_i32_0 = arith.constant 0 : i32
    return %arg0, %c0_i32 : i32, i32
  }
}

</mosaic_0001>

<bundles_post_ra>
// kernel: tpu_custom_call.1
= control target key start
LH: loop header
LB: loop body
LE: loop exit
PB: predicated region body
PF: predicated region fallthrough
CT: control target
= control target key end

     0   :  { %s844_s0 = inlined_call_operand.vmem [shape: f32[2,1024], index: 0, kind: input, shape index: {}]   ;;  %s845_s1 = inlined_call_operand.vmem [shape: f32[1024,32], index: 1, kind: input, shape index: {}]   ;;  %s846_s2 = inlined_call_operand.vmem [shape: f32[32,32], index: 2, kind: input, shape index: {}]   ;;  %s847_s3 = inlined_call_operand.hbm [shape: f32[2,32], index: 3, kind: output, shape index: {}]  }
   0x1   :  { %v39_v0 = vld [vmem:[%s845_s1 + $0x78] sm:$0xff]  ;;  %v38_v2 = vld [vmem:[%s845_s1 + $0x70] sm:$0xff]  ;;  %v37_v6 = vld [vmem:[%s845_s1 + $0x68] sm:$0xff] }
   0x2   :  { %v71_v1 = vld [vmem:[%s845_s1 + $0x178] sm:$0xff]  ;;  %173 = vmatpush.msra.mxu0 %v39_v0  ;;  %v70_v4 = vld [vmem:[%s845_s1 + $0x170] sm:$0xff]  ;;  %v69_v8 = vld [vmem:[%s845_s1 + $0x168] sm:$0xff] }
   0x3   :  { %213 = vmatpush.msra.mxu2 %v71_v1  ;;  %v55_v3 = vld [vmem:[%s845_s1 + $0xf8] sm:$0xff]  ;;  %v54_v7 = vld [vmem:[%s845_s1 + $0xf0] sm:$0xff]  ;;  %v53_v10 = vld [vmem:[%s845_s1 + $0xe8] sm:$0xff] }
   0x4   :  { %v87_v5 = vld [vmem:[%s845_s1 + $0x1f8] sm:$0xff]  ;;  %193 = vmatpush.msra.mxu1 %v55_v3  ;;  %174 = vmatpush.msra.mxu0 %v38_v2  ;;  %v86_v9 = vld [vmem:[%s845_s1 + $0x1f0] sm:$0xff]  ;;  %v36_v11 = vld [vmem:[%s845_s1 + $0x60] sm:$0xff] }
   0x5   :  { %233 = vmatpush.msra.mxu3 %v87_v5  ;;  %214 = vmatpush.msra.mxu2 %v70_v4  ;;  %v68_v12 = vld [vmem:[%s845_s1 + $0x160] sm:$0xff]  ;;  %v85_v13 = vld [vmem:[%s845_s1 + $0x1e8] sm:$0xff]  ;;  %v35_v16 = vld [vmem:[%s845_s1 + $0x58] sm:$0xff] }
   0x6   :  { %194 = vmatpush.msra.mxu1 %v54_v7  ;;  %175 = vmatpush.msra.mxu0 %v37_v6  ;;  %v52_v14 = vld [vmem:[%s845_s1 + $0xe0] sm:$0xff]  ;;  %v67_v17 = vld [vmem:[%s845_s1 + $0x158] sm:$0xff]  ;;  %v34_v20 = vld [vmem:[%s845_s1 + $0x50] sm:$0xff] }
   0x7   :  { %234 = vmatpush.msra.mxu3 %v86_v9  ;;  %215 = vmatpush.msra.mxu2 %v69_v8  ;;  %v84_v15 = vld [vmem:[%s845_s1 + $0x1e0] sm:$0xff]  ;;  %v51_v18 = vld [vmem:[%s845_s1 + $0xd8] sm:$0xff]  ;;  %v66_v21 = vld [vmem:[%s845_s1 + $0x150] sm:$0xff] }
   0x8   :  { %195 = vmatpush.msra.mxu1 %v53_v10  ;;  %176 = vmatpush.msra.mxu0 %v36_v11  ;;  %v83_v19 = vld [vmem:[%s845_s1 + $0x1d8] sm:$0xff]  ;;  %v50_v22 = vld [vmem:[%s845_s1 + $0xd0] sm:$0xff]  ;;  %v33_v24 = vld [vmem:[%s845_s1 + $0x48] sm:$0xff] }
   0x9   :  { %235 = vmatpush.msra.mxu3 %v85_v13  ;;  %216 = vmatpush.msra.mxu2 %v68_v12  ;;  %v82_v23 = vld [vmem:[%s845_s1 + $0x1d0] sm:$0xff]  ;;  %v65_v25 = vld [vmem:[%s845_s1 + $0x148] sm:$0xff]  ;;  %v32_v28 = vld [vmem:[%s845_s1 + $0x40] sm:$0xff] }
   0xa   :  { %196 = vmatpush.msra.mxu1 %v52_v14  ;;  %177 = vmatpush.msra.mxu0 %v35_v16  ;;  %v49_v26 = vld [vmem:[%s845_s1 + $0xc8] sm:$0xff]  ;;  %v64_v29 = vld [vmem:[%s845_s1 + $0x140] sm:$0xff]  ;;  %v31_v32 = vld [vmem:[%s845_s1 + $0x38] sm:$0xff] }
   0xb   :  { %236 = vmatpush.msra.mxu3 %v84_v15  ;;  %217 = vmatpush.msra.mxu2 %v67_v17  ;;  %v81_v27 = vld [vmem:[%s845_s1 + $0x1c8] sm:$0xff]  ;;  %v48_v30 = vld [vmem:[%s845_s1 + $0xc0] sm:$0xff]  ;;  %v63_v33 = vld [vmem:[%s845_s1 + $0x138] sm:$0xff] }
   0xc   :  { %197 = vmatpush.msra.mxu1 %v51_v18  ;;  %178 = vmatpush.msra.mxu0 %v34_v20  ;;  %v80_v31 = vld [vmem:[%s845_s1 + $0x1c0] sm:$0xff]  ;;  %v47_v34 = vld [vmem:[%s845_s1 + $0xb8] sm:$0xff]  ;;  %v30_v36 = vld [vmem:[%s845_s1 + $0x30] sm:$0xff] }
   0xd   :  { %237 = vmatpush.msra.mxu3 %v83_v19  ;;  %218 = vmatpush.msra.mxu2 %v66_v21  ;;  %v79_v35 = vld [vmem:[%s845_s1 + $0x1b8] sm:$0xff]  ;;  %v62_v37 = vld [vmem:[%s845_s1 + $0x130] sm:$0xff]  ;;  %v29_v40 = vld [vmem:[%s845_s1 + $0x28] sm:$0xff] }
   0xe   :  { %198 = vmatpush.msra.mxu1 %v50_v22  ;;  %179 = vmatpush.msra.mxu0 %v33_v24  ;;  %v46_v38 = vld [vmem:[%s845_s1 + $0xb0] sm:$0xff]  ;;  %v61_v41 = vld [vmem:[%s845_s1 + $0x128] sm:$0xff]  ;;  %v28_v44 = vld [vmem:[%s845_s1 + $0x20] sm:$0xff] }
   0xf   :  { %238 = vmatpush.msra.mxu3 %v82_v23  ;;  %219 = vmatpush.msra.mxu2 %v65_v25  ;;  %v78_v39 = vld [vmem:[%s845_s1 + $0x1b0] sm:$0xff]  ;;  %v45_v42 = vld [vmem:[%s845_s1 + $0xa8] sm:$0xff]  ;;  %v60_v45 = vld [vmem:[%s845_s1 + $0x120] sm:$0xff] }
  0x10   :  { %199 = vmatpush.msra.mxu1 %v49_v26  ;;  %180 = vmatpush.msra.mxu0 %v32_v28  ;;  %v77_v43 = vld [vmem:[%s845_s1 + $0x1a8] sm:$0xff]  ;;  %v44_v46 = vld [vmem:[%s845_s1 + $0xa0] sm:$0xff]  ;;  %v27_v48 = vld [vmem:[%s845_s1 + $0x18] sm:$0xff] }
  0x11   :  { %239 = vmatpush.msra.mxu3 %v81_v27  ;;  %220 = vmatpush.msra.mxu2 %v64_v29  ;;  %v76_v47 = vld [vmem:[%s845_s1 + $0x1a0] sm:$0xff]  ;;  %v59_v49 = vld [vmem:[%s845_s1 + $0x118] sm:$0xff]  ;;  %v26_v52 = vld [vmem:[%s845_s1 + $0x10] sm:$0xff] }
  0x12   :  { %200 = vmatpush.msra.mxu1 %v48_v30  ;;  %181 = vmatpush.msra.mxu0 %v31_v32  ;;  %v43_v50 = vld [vmem:[%s845_s1 + $0x98] sm:$0xff]  ;;  %v58_v53 = vld [vmem:[%s845_s1 + $0x110] sm:$0xff]  ;;  %v25_v56 = vld [vmem:[%s845_s1 + $0x8] sm:$0xff] }
  0x13   :  { %240 = vmatpush.msra.mxu3 %v80_v31  ;;  %221 = vmatpush.msra.mxu2 %v63_v33  ;;  %v75_v51 = vld [vmem:[%s845_s1 + $0x198] sm:$0xff]  ;;  %v42_v54 = vld [vmem:[%s845_s1 + $0x90] sm:$0xff]  ;;  %v57_v57 = vld [vmem:[%s845_s1 + $0x108] sm:$0xff] }
  0x14   :  { %201 = vmatpush.msra.mxu1 %v47_v34  ;;  %182 = vmatpush.msra.mxu0 %v30_v36  ;;  %v74_v55 = vld [vmem:[%s845_s1 + $0x190] sm:$0xff]  ;;  %v41_v58 = vld [vmem:[%s845_s1 + $0x88] sm:$0xff]  ;;  %v24_v60 = vld [vmem:[%s845_s1] sm:$0xff] }
  0x15   :  { %241 = vmatpush.msra.mxu3 %v79_v35  ;;  %222 = vmatpush.msra.mxu2 %v62_v37  ;;  %v73_v59 = vld [vmem:[%s845_s1 + $0x188] sm:$0xff]  ;;  %v56_v61 = vld [vmem:[%s845_s1 + $0x100] sm:$0xff]  ;;  %v103_v62 = vld [vmem:[%s845_s1 + $0x278] sm:$0xff] }
  0x16   :  { %202 = vmatpush.msra.mxu1 %v46_v38  ;;  %183 = vmatpush.msra.mxu0 %v29_v40  ;;  %v135_v63 = vld [vmem:[%s845_s1 + $0x378] sm:$0xff]  ;;  %v40_v0 = vld [vmem:[%s845_s1 + $0x80] sm:$0xff]  ;;  %v102_v2 = vld [vmem:[%s845_s1 + $0x270] sm:$0xff] }
  0x17   :  { %242 = vmatpush.msra.mxu3 %v78_v39  ;;  %223 = vmatpush.msra.mxu2 %v61_v41  ;;  %v72_v1 = vld [vmem:[%s845_s1 + $0x180] sm:$0xff]  ;;  %v119_v3 = vld [vmem:[%s845_s1 + $0x2f8] sm:$0xff]  ;;  %v134_v4 = vld [vmem:[%s845_s1 + $0x370] sm:$0xff] }
  0x18   :  { %203 = vmatpush.msra.mxu1 %v45_v42  ;;  %184 = vmatpush.msra.mxu0 %v28_v44  ;;  %v151_v5 = vld [vmem:[%s845_s1 + $0x3f8] sm:$0xff]  ;;  %v101_v6 = vld [vmem:[%s845_s1 + $0x268] sm:$0xff]  ;;  %v118_v7 = vld [vmem:[%s845_s1 + $0x2f0] sm:$0xff] }
  0x19   :  { %243 = vmatpush.msra.mxu3 %v77_v43  ;;  %224 = vmatpush.msra.mxu2 %v60_v45  ;;  %v133_v8 = vld [vmem:[%s845_s1 + $0x368] sm:$0xff]  ;;  %v150_v9 = vld [vmem:[%s845_s1 + $0x3f0] sm:$0xff]  ;;  %v100_v10 = vld [vmem:[%s845_s1 + $0x260] sm:$0xff] }
  0x1a   :  { %204 = vmatpush.msra.mxu1 %v44_v46  ;;  %185 = vmatpush.msra.mxu0 %v27_v48  ;;  %v117_v11 = vld [vmem:[%s845_s1 + $0x2e8] sm:$0xff]  ;;  %v21_v12 = vld [vmem:[%s844_s0] sm:$0xff]  ;;  %v99_v15 = vld [vmem:[%s845_s1 + $0x258] sm:$0xff] }
  0x1b   :  { %244 = vmatpush.msra.mxu3 %v76_v47  ;;  %225 = vmatpush.msra.mxu2 %v59_v49  ;;  %v132_v13 = vld [vmem:[%s845_s1 + $0x360] sm:$0xff]  ;;  %v149_v14 = vld [vmem:[%s845_s1 + $0x3e8] sm:$0xff]  ;;  %154 = vst [vmem:[#allocation1] ss:$4 sm:$0xff] %v21_v12  ;;  %v131_v17 = vld [vmem:[%s845_s1 + $0x358] sm:$0xff] }
  0x1c   :  { %205 = vmatpush.msra.mxu1 %v43_v50  ;;  %186 = vmatpush.msra.mxu0 %v26_v52  ;;  %v116_v16 = vld [vmem:[%s845_s1 + $0x2e0] sm:$0xff]  ;;  %v98_v19 = vld [vmem:[%s845_s1 + $0x250] sm:$0xff]  ;;  %v115_v20 = vld [vmem:[%s845_s1 + $0x2d8] sm:$0xff] }
  0x1d   :  { %245 = vmatpush.msra.mxu3 %v75_v51  ;;  %226 = vmatpush.msra.mxu2 %v58_v53  ;;  %v148_v18 = vld [vmem:[%s845_s1 + $0x3e0] sm:$0xff]  ;;  %v130_v21 = vld [vmem:[%s845_s1 + $0x350] sm:$0xff]  ;;  %v147_v22 = vld [vmem:[%s845_s1 + $0x3d8] sm:$0xff] }
  0x1e   :  { %206 = vmatpush.msra.mxu1 %v42_v54  ;;  %187 = vmatpush.msra.mxu0 %v25_v56  ;;  %v97_v23 = vld [vmem:[%s845_s1 + $0x248] sm:$0xff]  ;;  %v114_v24 = vld [vmem:[%s845_s1 + $0x2d0] sm:$0xff]  ;;  %v96_v28 = vld [vmem:[%s845_s1 + $0x240] sm:$0xff] }
  0x1f   :  { %246 = vmatpush.msra.mxu3 %v74_v55  ;;  %227 = vmatpush.msra.mxu2 %v57_v57  ;;  %v129_v25 = vld [vmem:[%s845_s1 + $0x348] sm:$0xff]  ;;  %v146_v26 = vld [vmem:[%s845_s1 + $0x3d0] sm:$0xff]  ;;  %v128_v30 = vld [vmem:[%s845_s1 + $0x340] sm:$0xff] }
  0x20   :  { %207 = vmatpush.msra.mxu1 %v41_v58  ;;  %188 = vmatpush.msra.mxu0 %v24_v60  ;;  %v22_v27 = vld [vmem:[%s844_s0 + $0x8] sm:$0xff]  ;;  %v95_v32 = vld [vmem:[%s845_s1 + $0x238] sm:$0xff]  ;;  %v112_v33 = vld [vmem:[%s845_s1 + $0x2c0] sm:$0xff] }
  0x21   :  { %247 = vmatpush.msra.mxu3 %v73_v59  ;;  %228 = vmatpush.msra.mxu2 %v56_v61  ;;  %v113_v29 = vld [vmem:[%s845_s1 + $0x2c8] sm:$0xff]  ;;  %156 = vst [vmem:[#allocation1 + $0x20] ss:$4 sm:$0xff] %v22_v27 }
  0x22   :  { %253 = vmatpush.msrb.mxu0 %v103_v62  ;;  %208 = vmatpush.msra.mxu1 %v40_v0  ;;  %v145_v31 = vld [vmem:[%s845_s1 + $0x3c8] sm:$0xff] }
  0x23   :  { %293 = vmatpush.msrb.mxu2 %v135_v63  ;;  %248 = vmatpush.msra.mxu3 %v72_v1 }
  0x24   :  { %254 = vmatpush.msrb.mxu0 %v102_v2  ;;  %273 = vmatpush.msrb.mxu1 %v119_v3 }
  0x25   :  { %294 = vmatpush.msrb.mxu2 %v134_v4  ;;  %313 = vmatpush.msrb.mxu3 %v151_v5 }
  0x26   :  { %255 = vmatpush.msrb.mxu0 %v101_v6  ;;  %274 = vmatpush.msrb.mxu1 %v118_v7 }
  0x27   :  { %295 = vmatpush.msrb.mxu2 %v133_v8  ;;  %314 = vmatpush.msrb.mxu3 %v150_v9 }
  0x28   :  { %256 = vmatpush.msrb.mxu0 %v100_v10  ;;  %275 = vmatpush.msrb.mxu1 %v117_v11 }
  0x29   :  { %296 = vmatpush.msrb.mxu2 %v132_v13  ;;  %315 = vmatpush.msrb.mxu3 %v149_v14 }
  0x2a   :  { %257 = vmatpush.msrb.mxu0 %v99_v15  ;;  %276 = vmatpush.msrb.mxu1 %v116_v16 }
  0x2b   :  { %297 = vmatpush.msrb.mxu2 %v131_v17  ;;  %316 = vmatpush.msrb.mxu3 %v148_v18 }
  0x2c   :  { %258 = vmatpush.msrb.mxu0 %v98_v19  ;;  %277 = vmatpush.msrb.mxu1 %v115_v20 }
  0x2d   :  { %298 = vmatpush.msrb.mxu2 %v130_v21  ;;  %317 = vmatpush.msrb.mxu3 %v147_v22 }
  0x2e   :  { %259 = vmatpush.msrb.mxu0 %v97_v23  ;;  %278 = vmatpush.msrb.mxu1 %v114_v24 }
  0x2f   :  { %299 = vmatpush.msrb.mxu2 %v129_v25  ;;  %318 = vmatpush.msrb.mxu3 %v146_v26 }
  0x30   :  { %8 = vsyncpa [#allocation4], 0  ;;  %260 = vmatpush.msrb.mxu0 %v96_v28  ;;  %279 = vmatpush.msrb.mxu1 %v113_v29  ;;  %v127_v34 = vld [vmem:[%s845_s1 + $0x338] sm:$0xff]  ;;  %v144_v35 = vld [vmem:[%s845_s1 + $0x3c0] sm:$0xff]  ;;  %vm19_vm0 = vcmask 254976   ;;  %v414_v10 = vmov 0.0  }
  0x31   :  { %300 = vmatpush.msrb.mxu2 %v128_v30  ;;  %319 = vmatpush.msrb.mxu3 %v145_v31  ;;  %v94_v36 = vld [vmem:[%s845_s1 + $0x230] sm:$0xff]  ;;  %v111_v37 = vld [vmem:[%s845_s1 + $0x2b8] sm:$0xff]  ;;  %v93_v40 = vld [vmem:[%s845_s1 + $0x228] sm:$0xff]  ;;  %20 = vst.msk [vmem:[#allocation2] sm:$0x3] %vm19_vm0, %v414_v10  ;;  %vm344_vm1 = vcmask 261120  }
  0x32   :  { %261 = vmatpush.msrb.mxu0 %v95_v32  ;;  %280 = vmatpush.msrb.mxu1 %v112_v33  ;;  %v126_v38 = vld [vmem:[%s845_s1 + $0x330] sm:$0xff]  ;;  %v143_v39 = vld [vmem:[%s845_s1 + $0x3b8] sm:$0xff]  ;;  %v125_v42 = vld [vmem:[%s845_s1 + $0x328] sm:$0xff]  ;;  %s376_s9 = sshll.u32 %s847_s3, 4  ;;  %s377_s9 = int_to_ptr.hbm [resolvable:$true] %s376_s9 }
  0x33   :  { %301 = vmatpush.msrb.mxu2 %v127_v34  ;;  %320 = vmatpush.msrb.mxu3 %v144_v35  ;;  %v110_v41 = vld [vmem:[%s845_s1 + $0x2b0] sm:$0xff]  ;;  %v92_v45 = vld [vmem:[%s845_s1 + $0x220] sm:$0xff]  ;;  %v109_v46 = vld [vmem:[%s845_s1 + $0x2a8] sm:$0xff] }
  0x34   :  { %262 = vmatpush.msrb.mxu0 %v94_v36  ;;  %281 = vmatpush.msrb.mxu1 %v111_v37  ;;  %v142_v43 = vld [vmem:[%s845_s1 + $0x3b0] sm:$0xff]  ;;  %v124_v47 = vld [vmem:[%s845_s1 + $0x320] sm:$0xff]  ;;  %v141_v48 = vld [vmem:[%s845_s1 + $0x3a8] sm:$0xff] }
  0x35   :  { %302 = vmatpush.msrb.mxu2 %v126_v38  ;;  %321 = vmatpush.msrb.mxu3 %v143_v39  ;;  %v159_v44 = vld.sshfl [vmem:[#allocation1 + $0x10] sm:$0xff pattern:$0x73625140]  ;;  %v157_v49 = vld.sshfl [vmem:[#allocation1] sm:$0xff pattern:$0x73625140] }
  0x36   :  { %263 = vmatpush.msrb.mxu0 %v93_v40  ;;  %282 = vmatpush.msrb.mxu1 %v110_v41  ;;  %v160_v50 = vld.sshfl [vmem:[#allocation1 + $0x18] sm:$0xff pattern:$0x73625140]  ;;  %v108_v52 = vld [vmem:[%s845_s1 + $0x2a0] sm:$0xff]  ;;  %v90_v56 = vld [vmem:[%s845_s1 + $0x210] sm:$0xff] }
  0x37   :  { %303 = vmatpush.msrb.mxu2 %v125_v42  ;;  %322 = vmatpush.msrb.mxu3 %v142_v43  ;;  %v91_v51 = vld [vmem:[%s845_s1 + $0x218] sm:$0xff]  ;;  %v140_v54 = vld [vmem:[%s845_s1 + $0x3a0] sm:$0xff]  ;;  %v158_v55 = vld.sshfl [vmem:[#allocation1 + $0x8] sm:$0xff pattern:$0x73625140] }
  0x38   :  { %229 = vmatmul.f32.vlgmr.msra.gmra.mxu2 %v159_v44  ;;  %264 = vmatpush.msrb.mxu0 %v92_v45  ;;  %v123_v53 = vld [vmem:[%s845_s1 + $0x318] sm:$0xff]  ;;  %v122_v58 = vld [vmem:[%s845_s1 + $0x310] sm:$0xff]  ;;  %v89_v60 = vld [vmem:[%s845_s1 + $0x208] sm:$0xff] }
  0x39   :  { %283 = vmatpush.msrb.mxu1 %v109_v46  ;;  %304 = vmatpush.msrb.mxu2 %v124_v47  ;;  %v107_v57 = vld [vmem:[%s845_s1 + $0x298] sm:$0xff]  ;;  %v106_v61 = vld [vmem:[%s845_s1 + $0x290] sm:$0xff]  ;;  %v121_v62 = vld [vmem:[%s845_s1 + $0x308] sm:$0xff] }
  0x3a   :  { %323 = vmatpush.msrb.mxu3 %v141_v48  ;;  %189 = vmatmul.f32.vlgmr.msra.gmra.mxu0 %v157_v49  ;;  %v139_v59 = vld [vmem:[%s845_s1 + $0x398] sm:$0xff]  ;;  %v138_v63 = vld [vmem:[%s845_s1 + $0x390] sm:$0xff]  ;;  %v88_v0 = vld [vmem:[%s845_s1 + $0x200] sm:$0xff] }
  0x3b   :  { %249 = vmatmul.f32.vlgmr.msra.gmra.mxu3 %v160_v50  ;;  %265 = vmatpush.msrb.mxu0 %v91_v51  ;;  %v105_v1 = vld [vmem:[%s845_s1 + $0x288] sm:$0xff]  ;;  %v120_v2 = vld [vmem:[%s845_s1 + $0x300] sm:$0xff]  ;;  %v163_v5 = vld.sshfl [vmem:[#allocation1 + $0x30] sm:$0xff pattern:$0x73625140] }
  0x3c   :  { %284 = vmatpush.msrb.mxu1 %v108_v52  ;;  %305 = vmatpush.msrb.mxu2 %v123_v53  ;;  %v137_v3 = vld [vmem:[%s845_s1 + $0x388] sm:$0xff]  ;;  %v161_v4 = vld.sshfl [vmem:[#allocation1 + $0x20] sm:$0xff pattern:$0x73625140]  ;;  %v343_v11 = vld [vmem:[%s846_s2 + $0x18] sm:$0xff] }
  0x3d   :  { %324 = vmatpush.msrb.mxu3 %v140_v54  ;;  %209 = vmatmul.f32.vlgmr.msra.gmra.mxu1 %v158_v55  ;;  %v104_v6 = vld [vmem:[%s845_s1 + $0x280] sm:$0xff]  ;;  %v162_v8 = vld.sshfl [vmem:[#allocation1 + $0x28] sm:$0xff pattern:$0x73625140]  ;;  %v342_v12 = vld [vmem:[%s846_s2 + $0x10] sm:$0xff] }
  0x3e   :  { %266 = vmatpush.msrb.mxu0 %v90_v56  ;;  %285 = vmatpush.msrb.mxu1 %v107_v57  ;;  %v136_v7 = vld [vmem:[%s845_s1 + $0x380] sm:$0xff]  ;;  %v164_v9 = vld.sshfl [vmem:[#allocation1 + $0x38] sm:$0xff pattern:$0x73625140]  ;;  %v341_v13 = vld [vmem:[%s846_s2 + $0x8] sm:$0xff] }
  0x3f   :  { %306 = vmatpush.msrb.mxu2 %v122_v58  ;;  %325 = vmatpush.msrb.mxu3 %v139_v59  ;;  %v340_v14 = vld [vmem:[%s846_s2] sm:$0xff]  ;;  %v23_v28 = vld [vmem:[#allocation2] sm:$0x3]  ;;  %s415_s2 = smov [#allocation3]  }
  0x40   :  { %267 = vmatpush.msrb.mxu0 %v89_v60  ;;  %286 = vmatpush.msrb.mxu1 %v106_v61  ;;  %s374_s6 = sshll.u32 %s415_s2, 4  ;;  %s375_s6 = int_to_ptr.vmem [resolvable:$true] %s374_s6 }
  0x41   :  { %307 = vmatpush.msrb.mxu2 %v121_v62  ;;  %326 = vmatpush.msrb.mxu3 %v138_v63 }
  0x42   :  { %268 = vmatpush.msrb.mxu0 %v88_v0  ;;  %287 = vmatpush.msrb.mxu1 %v105_v1 }
  0x43   :  { %308 = vmatpush.msrb.mxu2 %v120_v2  ;;  %327 = vmatpush.msrb.mxu3 %v137_v3 }
  0x44   :  { %269 = vmatmul.f32.vlgmr.msrb.gmra.mxu0 %v161_v4  ;;  %309 = vmatmul.f32.vlgmr.msrb.gmra.mxu2 %v163_v5 }
  0x45   :  { %288 = vmatpush.msrb.mxu1 %v104_v6  ;;  %328 = vmatpush.msrb.mxu3 %v136_v7 }
  0x46   :  { %289 = vmatmul.f32.vlgmr.msrb.gmra.mxu1 %v162_v8  ;;  %329 = vmatmul.f32.vlgmr.msrb.gmra.mxu3 %v164_v9 }
  0x47   :  { %360 = vmatpush.msra.mxu0 %v343_v11 }
  0x49   :  { %361 = vmatpush.msra.mxu0 %v342_v12 }
  0x4b   :  { %362 = vmatpush.msra.mxu0 %v341_v13 }
  0x4d   :  { %363 = vmatpush.msra.mxu0 %v340_v14 }
  0xb7   :  { %v190_v15 = vpop.f32.mrf.mxu0 }
  0xba   :  { %v210_v16 = vpop.f32.mrf.mxu1 }
  0xbb   :  { %v211_v17 = vadd.f32 %v210_v16, %v190_v15  ;;  %v230_v18 = vpop.f32.mrf.mxu2 }
  0xbd   :  { %v231_v19 = vadd.f32 %v230_v18, %v211_v17 }
  0xbe   :  { %v250_v20 = vpop.f32.mrf.mxu3 }
  0xbf   :  { %v251_v21 = vadd.f32 %v250_v20, %v231_v19 }
  0xc1   :  { %v270_v22 = vpop.f32.mrf.mxu0 }
  0xc2   :  { %v271_v23 = vadd.f32 %v270_v22, %v251_v21 }
  0xc3   :  { %v290_v24 = vpop.f32.mrf.mxu1 }
  0xc4   :  { %v291_v25 = vadd.f32 %v290_v24, %v271_v23 }
  0xc7   :  { %v310_v26 = vpop.f32.mrf.mxu2 }
  0xc8   :  { %v311_v27 = vadd.f32 %v310_v26, %v291_v25 }
  0xc9   :  { %v330_v29 = vpop.f32.mrf.mxu3 }
  0xca   :  { %v331_v30 = vadd.f32 %v330_v29, %v311_v27 }
  0xcc   :  { %v333_v31 = vadd.f32 %v331_v30, %v23_v28 }
  0xce   :  { %335 = vst.msk [vmem:[#allocation2] sm:$0x3] %vm19_vm0, %v333_v31 }
  0xd5   :  { %v339_v32 = vld [vmem:[#allocation2] sm:$0x3] }
  0xd6   :  { %385 = vmatmul.msk.f32.vlgmr.msra.gmra.mxu0 %vm344_vm1, %v339_v32 }
 0x153   :  { %v365_v33 = vpop.f32.mrf.mxu0 }
 0x154   :  { %368 = vst.msk [vmem:[#allocation3] sm:$0x3] %vm19_vm0, %v365_v33 }
 0x155   :  { %379 = dma.vmem_to_hbm [thread:$0]  %s375_s6, 32, %s377_s9, [#allocation4]  }
 0x156   :  { %412 = dma.done.wait [#allocation4], 32  }
 0x157   :  { %413 = vsyncadd [#allocation4], 4294967264 }
 0x158   :  { %384 = vsyncpa [#allocation4], 1 }

</bundles_post_ra>
